<compile_context>
chip_gen: v6e
topology: v6e:2x2x1
jax: 0.10.0
libtpu: 0.0.40
codegen_flags: <defaults>
</compile_context>

<pallas_src>
import jax
import jax.numpy as jnp
from jax.experimental import pallas as pl
from jax.experimental.pallas import tpu as pltpu

_LANES = 128
_SUBLANES = 8


def _round_up(x, m):
    return ((x + m - 1) // m) * m


def _fused_classifier_kernel(x_ref, w_in_ref, w_cls_ref, b_ref, out_ref):
    # (TM, K) @ (K, F) -> (TM, F); f32 accumulation on the MXU.
    fused = jnp.dot(x_ref[...], w_in_ref[...], preferred_element_type=jnp.float32)
    # (TM, F) @ (F, Npad) + (1, Npad) -> (TM, Npad); lane-dense (128-multiple) store.
    out = jnp.dot(fused.astype(w_cls_ref.dtype), w_cls_ref[...],
                  preferred_element_type=jnp.float32) + b_ref[...]
    out_ref[...] = out.astype(out_ref.dtype)


def custom_classifier_no_external(img_features, txt_features, params, *,
                                  block_b=512, compute_dtype=None):
    """Pallas implementation of CustomClassifiernoExternal.forward.

    img_features: (B, img_feature_dim)
    txt_features: (B, ...) -- flattened to (B, -1) like torch .view
    params: w_img (img_dim, fusion), b_img (fusion,), w_txt (txt_dim, fusion),
            b_txt (fusion,), w_cls (fusion, num_classes), b_cls (num_classes,)
            (Linear weights stored transposed relative to torch.)
    """
    out_dtype = img_features.dtype
    B = txt_features.shape[0]
    txt_flat = txt_features.reshape(B, -1)                      # torch .view(B, -1)

    # --- Algebraic simplification (exact): concat projections, fold biases. ---
    x = jnp.concatenate([img_features, txt_flat], axis=1)       # (B, K)
    w_in = jnp.concatenate([params["w_img"], params["w_txt"]], axis=0)   # (K, F)
    w_cls = params["w_cls"]                                     # (F, C)
    C = w_cls.shape[1]

    # --- Lane-dense output: pad classes to a multiple of 128 with zeros. ---
    n_pad = _round_up(C, _LANES)
    w_cls_pad = jnp.zeros((w_cls.shape[0], n_pad), w_cls.dtype).at[:, :C].set(w_cls)
    b_cls_pad = jnp.zeros((n_pad,), params["b_cls"].dtype).at[:C].set(params["b_cls"])
    # Single effective bias, folded once in the wrapper.
    b_eff = ((params["b_img"] + params["b_txt"]) @ w_cls_pad + b_cls_pad)
    b_eff = b_eff.reshape(1, n_pad).astype(jnp.float32)

    # --- Optional bf16 fast path (accumulation stays f32 inside the kernel). ---
    if compute_dtype is not None:
        x = x.astype(compute_dtype)
        w_in = w_in.astype(compute_dtype)
        w_cls_pad = w_cls_pad.astype(compute_dtype)

    # --- Batch tiling: pick a (sublane-aligned) tile and pad B up to it. ---
    tm = min(block_b, _round_up(B, _SUBLANES))
    b_padded = _round_up(B, tm)
    if b_padded != B:
        x = jnp.pad(x, ((0, b_padded - B), (0, 0)))             # zero rows, sliced off below

    K = x.shape[1]
    F = w_in.shape[1]
    grid = (b_padded // tm,)

    def _nbytes(a):
        return a.size * a.dtype.itemsize

    cost = pl.CostEstimate(
        flops=2 * b_padded * K * F + 2 * b_padded * F * n_pad,
        transcendentals=0,
        bytes_accessed=_nbytes(x) + _nbytes(w_in) + _nbytes(w_cls_pad) + _nbytes(b_eff)
        + b_padded * n_pad * jnp.dtype(out_dtype).itemsize,
    )

    out_pad = pl.pallas_call(
        _fused_classifier_kernel,
        out_shape=jax.ShapeDtypeStruct((b_padded, n_pad), out_dtype),
        grid_spec=pltpu.PrefetchScalarGridSpec(
            num_scalar_prefetch=0,
            grid=grid,
            in_specs=[
                pl.BlockSpec((tm, K), lambda i: (i, 0)),        # activations: tiled on batch
                pl.BlockSpec((K, F), lambda i: (0, 0)),         # weights stay resident
                pl.BlockSpec((F, n_pad), lambda i: (0, 0)),
                pl.BlockSpec((1, n_pad), lambda i: (0, 0)),
            ],
            out_specs=pl.BlockSpec((tm, n_pad), lambda i: (i, 0)),
        ),
        compiler_params=pltpu.CompilerParams(
            dimension_semantics=("parallel",),       # shard batch tiles across TCs on v7x
            vmem_limit_bytes=32 * 1024 * 1024,       # explicit, safe on v7x's 64 MiB VMEM
        ),
        cost_estimate=cost,
    )(x, w_in, w_cls_pad, b_eff)

    return out_pad[:B, :C]


def init_params(key, img_feature_dim, txt_feature_dim, fusion_dim, num_classes=2):
    """Deterministic synthetic parameters (same shapes as the nn.Linear layers)."""
    k1, k2, k3, k4, k5, k6 = jax.random.split(key, 6)
    scale = 0.05
    return {
        # stored transposed relative to torch: (in_features, out_features)
        "w_img": scale * jax.random.normal(k1, (img_feature_dim, fusion_dim), jnp.float32),
        "b_img": scale * jax.random.normal(k2, (fusion_dim,), jnp.float32),
        "w_txt": scale * jax.random.normal(k3, (txt_feature_dim, fusion_dim), jnp.float32),
        "b_txt": scale * jax.random.normal(k4, (fusion_dim,), jnp.float32),
        "w_cls": scale * jax.random.normal(k5, (fusion_dim, num_classes), jnp.float32),
        "b_cls": scale * jax.random.normal(k6, (num_classes,), jnp.float32),
    }


def _reference(img, txt, p):
    txt = txt.reshape(txt.shape[0], -1)
    img_f = img @ p["w_img"] + p["b_img"]
    txt_f = txt @ p["w_txt"] + p["b_txt"]
    return (img_f + txt_f) @ p["w_cls"] + p["b_cls"]


if __name__ == "__main__":
    batch = 8
    img_feature_dim = 32
    txt_feature_dim = 64          # txt input given as (B, 8, 8) and flattened
    fusion_dim = 32
    num_classes = 2

    key = jax.random.PRNGKey(0)
    kp, ki, kt = jax.random.split(key, 3)

    params = init_params(kp, img_feature_dim, txt_feature_dim, fusion_dim, num_classes)
    img_features = jax.random.normal(ki, (batch, img_feature_dim), jnp.float32)
    txt_features = jax.random.normal(kt, (batch, 8, 8), jnp.float32)   # flattens to (B, 64)

    out = custom_classifier_no_external(img_features, txt_features, params)
    out = jax.block_until_ready(out)
    ref = _reference(img_features, txt_features, params)
    assert out.shape == (batch, num_classes)
    assert jnp.allclose(out, ref, atol=1e-4, rtol=1e-4)

    # Exercise the batch-padding / slicing path with a non-aligned batch.
    out5 = custom_classifier_no_external(img_features[:5], txt_features[:5], params)
    out5 = jax.block_until_ready(out5)
    assert out5.shape == (5, num_classes)
    assert jnp.allclose(out5, ref[:5], atol=1e-4, rtol=1e-4)

    print("KERNEL_OK")
</pallas_src>

<mosaic_0001>
module attributes {stable_mosaic.version = 11 : i64} {
  func.func @_fused_classifier_kernel(%arg0: i32, %arg1: memref<8x96xf32, #tpu.memory_space<vmem>>, %arg2: memref<96x32xf32, #tpu.memory_space<vmem>>, %arg3: memref<32x128xf32, #tpu.memory_space<vmem>>, %arg4: memref<1x128xf32, #tpu.memory_space<vmem>>, %arg5: memref<8x128xf32, #tpu.memory_space<vmem>>) attributes {dimension_semantics = [#tpu.dimension_semantics<parallel>], iteration_bounds = array<i64: 1>, scalar_prefetch = 0 : i64, scratch_operands = 0 : i64, tpu.core_type = #tpu.core_type<tc>, window_params = [{transform_indices = @transform_0, window_bounds = array<i64: 8, 96>}, {pipeline_mode = #tpu.pipeline_mode<synchronous>, transform_indices = @transform_1, window_bounds = array<i64: 96, 32>}, {pipeline_mode = #tpu.pipeline_mode<synchronous>, transform_indices = @transform_2, window_bounds = array<i64: 32, 128>}, {pipeline_mode = #tpu.pipeline_mode<synchronous>, transform_indices = @transform_3, window_bounds = array<i64: 1, 128>}, {transform_indices = @transform_4, window_bounds = array<i64: 8, 128>}]} {
    %c0 = arith.constant 0 : index
    %c0_0 = arith.constant 0 : index
    %0 = vector.load %arg1[%c0, %c0_0] : memref<8x96xf32, #tpu.memory_space<vmem>>, vector<8x96xf32>
    %c0_1 = arith.constant 0 : index
    %c0_2 = arith.constant 0 : index
    %1 = vector.load %arg2[%c0_1, %c0_2] : memref<96x32xf32, #tpu.memory_space<vmem>>, vector<96x32xf32>
    %cst = arith.constant dense<0.000000e+00> : vector<8x32xf32>
    %2 = tpu.matmul %0, %1, %cst {dimension_numbers = #tpu.dot_dimension_numbers<[1], [0], [0], [1], [0, 0, 1, 1], [], []>} : vector<8x96xf32>, vector<96x32xf32>, vector<8x32xf32> -> vector<8x32xf32>
    %c0_3 = arith.constant 0 : index
    %c0_4 = arith.constant 0 : index
    %3 = vector.load %arg3[%c0_3, %c0_4] : memref<32x128xf32, #tpu.memory_space<vmem>>, vector<32x128xf32>
    %cst_5 = arith.constant dense<0.000000e+00> : vector<8x128xf32>
    %4 = tpu.matmul %2, %3, %cst_5 {dimension_numbers = #tpu.dot_dimension_numbers<[1], [0], [0], [1], [0, 0, 1, 1], [], []>} : vector<8x32xf32>, vector<32x128xf32>, vector<8x128xf32> -> vector<8x128xf32>
    %c0_6 = arith.constant 0 : index
    %c0_7 = arith.constant 0 : index
    %5 = vector.load %arg4[%c0_6, %c0_7] : memref<1x128xf32, #tpu.memory_space<vmem>>, vector<1x128xf32>
    %6 = vector.broadcast %5 : vector<1x128xf32> to vector<8x128xf32>
    %7 = arith.addf %4, %6 : vector<8x128xf32>
    %c0_8 = arith.constant 0 : index
    %c0_9 = arith.constant 0 : index
    %8 = vector.load %arg5[%c0_8, %c0_9] : memref<8x128xf32, #tpu.memory_space<vmem>>, vector<8x128xf32>
    tpu.vector_store %arg5[%c0_8, %c0_9], %7 {strides = array<i32>} : memref<8x128xf32, #tpu.memory_space<vmem>>, vector<8x128xf32>,
    return
  }
  func.func @transform_0(%arg0: i32) -> (i32, i32) {
    %c0_i32 = arith.constant 0 : i32
    %c0_i32_0 = arith.constant 0 : i32
    return %arg0, %c0_i32 : i32, i32
  }
  func.func @transform_1(%arg0: i32) -> (i32, i32) {
    %c0_i32 = arith.constant 0 : i32
    %c0_i32_0 = arith.constant 0 : i32
    %c0_i32_1 = arith.constant 0 : i32
    return %c0_i32, %c0_i32_0 : i32, i32
  }
  func.func @transform_2(%arg0: i32) -> (i32, i32) {
    %c0_i32 = arith.constant 0 : i32
    %c0_i32_0 = arith.constant 0 : i32
    %c0_i32_1 = arith.constant 0 : i32
    return %c0_i32, %c0_i32_0 : i32, i32
  }
  func.func @transform_3(%arg0: i32) -> (i32, i32) {
    %c0_i32 = arith.constant 0 : i32
    %c0_i32_0 = arith.constant 0 : i32
    %c0_i32_1 = arith.constant 0 : i32
    return %c0_i32, %c0_i32_0 : i32, i32
  }
  func.func @transform_4(%arg0: i32) -> (i32, i32) {
    %c0_i32 = arith.constant 0 : i32
    %c0_i32_0 = arith.constant 0 : i32
    return %arg0, %c0_i32 : i32, i32
  }
}

</mosaic_0001>

<bundles_post_ra>
// kernel: tpu_custom_call.1
= control target key start
LH: loop header
LB: loop body
LE: loop exit
PB: predicated region body
PF: predicated region fallthrough
CT: control target
= control target key end

     0   :  { %v289_v1 = vmov 0.0   ;;  %vm290_vm0 = vmmov 0   ;;  %s374_s0 = inlined_call_operand.vmem [shape: f32[8,96], index: 0, kind: input, shape index: {}]   ;;  %s375_s1 = inlined_call_operand.vmem [shape: f32[96,32], index: 1, kind: input, shape index: {}]   ;;  %s376_s2 = inlined_call_operand.vmem [shape: f32[32,128], index: 2, kind: input, shape index: {}]   ;;  %s377_s3 = inlined_call_operand.vmem [shape: f32[1,128], index: 3, kind: input, shape index: {}]   ;;  %s378_s4 = inlined_call_operand.hbm [shape: f32[8,128], index: 4, kind: output, shape index: {}]  }
   0x1   :  { %v30_v0 = vld [vmem:[%s375_s1 + $0x58] sm:$0xff]  ;;  %226 = vmatprep.subr.mxu0 %v289_v1  ;;  %v29_v2 = vld [vmem:[%s375_s1 + $0x50] sm:$0xff]  ;;  %250 = vmatprep.mubr.msk.f32.mxu0 %vm290_vm0, %v289_v1  ;;  %v28_v3 = vld [vmem:[%s375_s1 + $0x48] sm:$0xff] }
   0x2   :  { %227 = vmatpush3.msra.mxu0 %v30_v0  ;;  %253 = vmatprep.subr.mxu1 %v289_v1  ;;  %v108_v4 = vld [vmem:[%s376_s2 + $0x18] sm:$0xff]  ;;  %v107_v5 = vld [vmem:[%s376_s2 + $0x10] sm:$0xff]  ;;  %v27_v6 = vld [vmem:[%s375_s1 + $0x40] sm:$0xff] }
   0x3   :  { %228 = vmatprep.subr.mxu0 %v289_v1  ;;  %261 = vmatprep.mubr.msk.f32.mxu1 %vm290_vm0, %v289_v1 }
   0x4   :  { %229 = vmatpush3.msra.mxu0 %v29_v2  ;;  %254 = vmatpush3.msra.mxu1 %v108_v4 }
   0x5   :  { %230 = vmatprep.subr.mxu0 %v289_v1 }
   0x6   :  { %9 = vsyncpa [#allocation3], 0  ;;  %231 = vmatpush3.msra.mxu0 %v28_v3  ;;  %255 = vmatprep.subr.mxu1 %v289_v1  ;;  %v106_v7 = vld [vmem:[%s376_s2 + $0x8] sm:$0xff]  ;;  %v26_v8 = vld [vmem:[%s375_s1 + $0x38] sm:$0xff]  ;;  %vm31_vm1 = vcmask 785408   ;;  %vm116_vm2 = vcmask 261120  }
   0x7   :  { %232 = vmatprep.subr.mxu0 %v289_v1  ;;  %256 = vmatpush3.msra.mxu1 %v107_v5  ;;  %v25_v9 = vld [vmem:[%s375_s1 + $0x30] sm:$0xff]  ;;  %v24_v10 = vld [vmem:[%s375_s1 + $0x28] sm:$0xff]  ;;  %v23_v11 = vld [vmem:[%s375_s1 + $0x20] sm:$0xff]  ;;  %s291_s24 = smov [#allocation2]  }
   0x8   :  { %233 = vmatpush3.msra.mxu0 %v27_v6  ;;  %257 = vmatprep.subr.mxu1 %v289_v1  ;;  %v22_v12 = vld [vmem:[%s375_s1 + $0x18] sm:$0xff]  ;;  %v21_v13 = vld [vmem:[%s375_s1 + $0x10] sm:$0xff]  ;;  %v20_v14 = vld [vmem:[%s375_s1 + $0x8] sm:$0xff]  ;;  %s197_s25 = sshll.u32 %s291_s24, 4  ;;  %s198_s25 = int_to_ptr.vmem [resolvable:$true] %s197_s25 }
   0x9   :  { %234 = vmatprep.subr.mxu0 %v289_v1  ;;  %258 = vmatpush3.msra.mxu1 %v106_v7  ;;  %v19_v15 = vld [vmem:[%s375_s1] sm:$0xff]  ;;  %p272_p1 = scmp.lt.s32.totalorder %s198_s25, %s198_s25 }
   0xa   :  { %235 = vmatpush3.msra.mxu0 %v26_v8  ;;  %259 = vmatprep.subr.mxu1 %v289_v1  ;;  %v18_v16 = vld [vmem:[%s374_s0] sm:$0xff]  ;;  %s267_s0 = scalar_lea.vmem %s198_s25, 128 }
   0xb   :  { %236 = vmatprep.subr.mxu0 %v289_v1  ;;  %v105_v17 = vld [vmem:[%s376_s2] sm:$0xff]  ;;  %p268_p0 = scmp.ne.s32.totalorder %s198_s25, %s267_s0  ;;  %p273_p2 = scmp.lt.s32.totalorder %s267_s0, %s267_s0 }
   0xc   :  { %237 = vmatpush3.msra.mxu0 %v25_v9  ;;  %260 = vmatpush3.msra.mxu1 %v105_v17  ;;  %v206_v20 = vld [vmem:[%s377_s3] ss:$0 sm:$0xff] }
   0xd   :  { %238 = vmatprep.subr.mxu0 %v289_v1  ;;  %p274_p3 = por %p273_p2, %p272_p1 }
   0xe   :  { %239 = vmatpush3.msra.mxu0 %v24_v10 }
   0xf   :  { %240 = vmatprep.subr.mxu0 %v289_v1  ;;  %p275_p4 = pnand %p274_p3, %p268_p0 }
  0x10   :  { %241 = vmatpush3.msra.mxu0 %v23_v11 }
  0x11   :  { %242 = vmatprep.subr.mxu0 %v289_v1 }
  0x12   :  { %243 = vmatpush3.msra.mxu0 %v22_v12 }
  0x13   :  { %244 = vmatprep.subr.mxu0 %v289_v1 }
  0x14   :  { %245 = vmatpush3.msra.mxu0 %v21_v13 }
  0x15   :  { %246 = vmatprep.subr.mxu0 %v289_v1 }
  0x16   :  { %247 = vmatpush3.msra.mxu0 %v20_v14 }
  0x17   :  { %248 = vmatprep.subr.mxu0 %v289_v1 }
  0x18   :  { %249 = vmatpush3.msra.mxu0 %v19_v15 }
  0x19   :  { %251 = vmatmul.mubr.msk.f32.vlgmr.msra.gmra.mxu0 %vm31_vm1, %v18_v16 }
  0xd9   :  { %v101_v18 = vpop.f32.mrf.mxu0 }
  0xda   :  { %262 = vmatmul.mubr.msk.f32.vlgmr.msra.gmra.mxu1 %vm116_vm2, %v101_v18 }
  0xdb   :  { %v252_v19 = vpop.f32.mrf.mxu0 }
 0x19a   :  { %v186_v21 = vpop.f32.mrf.mxu1 }
 0x19b   :  { %v187_v22 = vadd.f32 %v206_v20, %v186_v21 }
 0x19c   :  { %v263_v23 = vpop.f32.mrf.mxu1 }
 0x19d   :  { %190 = vst [vmem:[#allocation2] sm:$0xff] %v187_v22 }
 0x19e   :  { %278 = shalt.err (!%p275_p4)
}
 0x19f   :  { %200 = dma.vmem_to_hbm [thread:$0]  %s198_s25, 128, %s378_s4, [#allocation3]  }
 0x1a0   :  { %287 = dma.done.wait [#allocation3], 128  }
 0x1a1   :  { %288 = vsyncadd [#allocation3], 4294967168 }
 0x1a2   :  { %204 = vsyncpa [#allocation3], 1 }

</bundles_post_ra>
